<compile_context>
chip_gen: v7x
topology: tpu7x:2x2x1
jax: 0.10.0
libtpu: 0.0.40
codegen_flags: <defaults>
</compile_context>

<pallas_src>
import jax
import jax.numpy as jnp
from jax.experimental import pallas as pl
from jax.experimental.pallas import tpu as pltpu


# ---------------------------------------------------------------------------
# Kernels
# ---------------------------------------------------------------------------

def _fused_branches_kernel(x4_ref, w4_ref, b4_ref,
                           x3_ref, w3_ref, b3_ref,
                           o4_ref, o3_ref):
    # x*_ref: (Cin*, T) lane-dense spatial tile
    # w*_ref: (Cout, Cin*) conv weight with BN scale pre-folded
    # b*_ref: (Cout, 1)   folded BN bias (f32)
    y4 = jnp.dot(w4_ref[...], x4_ref[...], preferred_element_type=jnp.float32)
    o4_ref[...] = jnp.maximum(y4 + b4_ref[...], 0.0).astype(o4_ref.dtype)
    y3 = jnp.dot(w3_ref[...], x3_ref[...], preferred_element_type=jnp.float32)
    o3_ref[...] = jnp.maximum(y3 + b3_ref[...], 0.0).astype(o3_ref.dtype)


def _single_branch_kernel(x_ref, w_ref, b_ref, o_ref):
    y = jnp.dot(w_ref[...], x_ref[...], preferred_element_type=jnp.float32)
    o_ref[...] = jnp.maximum(y + b_ref[...], 0.0).astype(o_ref.dtype)


# ---------------------------------------------------------------------------
# Wrapper helpers
# ---------------------------------------------------------------------------

_LANE = 128
_TILE_VMEM_BUDGET = 24 * 1024 * 1024   # double-buffered spatial in/out tiles
_VMEM_LIMIT_CAP = 40 * 1024 * 1024     # <= v7x 64 MiB physical, > v5e 16 MiB default


def _fold_bn(weight, gamma, beta, mean, var, eps):
    """Fold eval-mode BatchNorm into the 1x1 conv weight + a bias vector."""
    Cout, Cin = weight.shape[0], weight.shape[1]
    w = weight.reshape(Cout, Cin).astype(jnp.float32)
    scale = (gamma / jnp.sqrt(var + eps)).astype(jnp.float32)
    w_folded = w * scale[:, None]                       # scale folded into weight
    bias = (beta - mean * scale).reshape(Cout, 1).astype(jnp.float32)
    return w_folded, bias


def _derive_tile(hw, batch, per_lane_bytes, requested=None):
    """Spatial (lane) tile derived from the VMEM budget.

    per_lane_bytes: bytes of double-buffered input+output tile per lane,
      i.e. 2 * (sum(Cin)*in_bytes + n_branches*Cout*out_bytes).
    """
    t = _TILE_VMEM_BUDGET // max(per_lane_bytes, 1)
    if requested is not None:
        t = min(t, int(requested))
    t = max(_LANE, (t // _LANE) * _LANE)
    if t >= hw:
        t = hw                                          # full spatial extent
    # Guarantee >= 2 grid steps so both v7x TensorCores get work.
    if batch * ((hw + t - 1) // t) < 2 and hw >= 2 * _LANE:
        t = max(_LANE, ((hw // 2) // _LANE) * _LANE)
    return t


def _vmem_limit(cins, cout, t, in_bytes, out_bytes):
    """Scoped-VMEM request covering double-buffered tiles + weights + margin."""
    tiles = 2 * t * (sum(cins) * in_bytes + len(cins) * cout * out_bytes)
    weights = 2 * sum(cout * c * in_bytes + cout * 4 for c in cins)
    est = tiles + weights
    return int(min(_VMEM_LIMIT_CAP, max(32 << 20, est + (8 << 20))))


# ---------------------------------------------------------------------------
# Public wrappers
# ---------------------------------------------------------------------------

def conv1x1_bn_relu(x, weight, gamma, beta, mean, var, eps=1e-5,
                    tile_hw=None, out_dtype=None):
    """Single branch: 1x1 conv (no bias) + BatchNorm2d (eval) + ReLU. NCHW."""
    B, Cin, H, W = x.shape
    Cout = weight.shape[0]
    HW = H * W
    out_dtype = x.dtype if out_dtype is None else jnp.dtype(out_dtype)

    x3d = x.reshape(B, Cin, HW)                         # free reshape, no transpose
    w_f, bias = _fold_bn(weight, gamma, beta, mean, var, eps)
    w_f = w_f.astype(x.dtype)

    in_b = jnp.dtype(x.dtype).itemsize
    out_b = jnp.dtype(out_dtype).itemsize
    per_lane = 2 * (Cin * in_b + Cout * out_b)
    t = _derive_tile(HW, B, per_lane, tile_hw)
    vmem_limit = _vmem_limit([Cin], Cout, t, in_b, out_b)

    out = pl.pallas_call(
        _single_branch_kernel,
        out_shape=jax.ShapeDtypeStruct((B, Cout, HW), out_dtype),
        grid_spec=pltpu.PrefetchScalarGridSpec(
            num_scalar_prefetch=0,
            grid=(B, pl.cdiv(HW, t)),
            in_specs=[
                pl.BlockSpec((None, Cin, t), lambda b, s: (b, 0, s)),
                pl.BlockSpec((Cout, Cin), lambda b, s: (0, 0)),
                pl.BlockSpec((Cout, 1), lambda b, s: (0, 0)),
            ],
            out_specs=pl.BlockSpec((None, Cout, t), lambda b, s: (b, 0, s)),
        ),
        compiler_params=pltpu.CompilerParams(
            dimension_semantics=("parallel", "parallel"),
            vmem_limit_bytes=vmem_limit),
    )(x3d, w_f, bias)
    return out.reshape(B, Cout, H, W)


def shrink_channel_s3s4(xs4, xs3, params_s4, params_s3, eps=1e-5,
                        tile_hw=None, out_dtype=None):
    """Fused forward of both branches in a single pallas_call when possible."""
    B4, Cin4, H4, W4 = xs4.shape
    B3, Cin3, H3, W3 = xs3.shape
    Cout = params_s4[0].shape[0]
    assert params_s3[0].shape[0] == Cout, "branches must share out_channels"

    if (B4, H4 * W4) != (B3, H3 * W3):
        # Different batch/spatial footprints -> run branches as two calls.
        return (conv1x1_bn_relu(xs4, *params_s4, eps=eps,
                                tile_hw=tile_hw, out_dtype=out_dtype),
                conv1x1_bn_relu(xs3, *params_s3, eps=eps,
                                tile_hw=tile_hw, out_dtype=out_dtype))

    HW = H4 * W4
    out_dtype4 = xs4.dtype if out_dtype is None else jnp.dtype(out_dtype)
    out_dtype3 = xs3.dtype if out_dtype is None else jnp.dtype(out_dtype)

    x4 = xs4.reshape(B4, Cin4, HW)
    x3 = xs3.reshape(B3, Cin3, HW)
    w4, b4 = _fold_bn(*params_s4, eps)
    w3, b3 = _fold_bn(*params_s3, eps)
    w4 = w4.astype(xs4.dtype)
    w3 = w3.astype(xs3.dtype)

    in_b = max(jnp.dtype(xs4.dtype).itemsize, jnp.dtype(xs3.dtype).itemsize)
    out_b = max(jnp.dtype(out_dtype4).itemsize, jnp.dtype(out_dtype3).itemsize)
    per_lane = 2 * ((Cin4 + Cin3) * in_b + 2 * Cout * out_b)
    t = _derive_tile(HW, B4, per_lane, tile_hw)
    vmem_limit = _vmem_limit([Cin4, Cin3], Cout, t, in_b, out_b)

    out4, out3 = pl.pallas_call(
        _fused_branches_kernel,
        out_shape=(jax.ShapeDtypeStruct((B4, Cout, HW), out_dtype4),
                   jax.ShapeDtypeStruct((B3, Cout, HW), out_dtype3)),
        grid_spec=pltpu.PrefetchScalarGridSpec(
            num_scalar_prefetch=0,
            grid=(B4, pl.cdiv(HW, t)),
            in_specs=[
                pl.BlockSpec((None, Cin4, t), lambda b, s: (b, 0, s)),
                pl.BlockSpec((Cout, Cin4), lambda b, s: (0, 0)),
                pl.BlockSpec((Cout, 1), lambda b, s: (0, 0)),
                pl.BlockSpec((None, Cin3, t), lambda b, s: (b, 0, s)),
                pl.BlockSpec((Cout, Cin3), lambda b, s: (0, 0)),
                pl.BlockSpec((Cout, 1), lambda b, s: (0, 0)),
            ],
            out_specs=(pl.BlockSpec((None, Cout, t), lambda b, s: (b, 0, s)),
                       pl.BlockSpec((None, Cout, t), lambda b, s: (b, 0, s))),
        ),
        compiler_params=pltpu.CompilerParams(
            dimension_semantics=("parallel", "parallel"),
            vmem_limit_bytes=vmem_limit),
    )(x4, w4, b4, x3, w3, b3)

    return (out4.reshape(B4, Cout, H4, W4),
            out3.reshape(B3, Cout, H3, W3))


# ---------------------------------------------------------------------------
# Module
# ---------------------------------------------------------------------------

class ShrinkChannelS3S4Pallas:
    """JAX/Pallas equivalent of ShrinkChannelS3S4 (BatchNorm in eval mode)."""

    def __init__(self, in_channels, out_channels, key):
        ks = jax.random.split(key, 10)
        # downsample branch (input has in_channels)
        self.w_s4 = jax.random.normal(
            ks[0], (out_channels, in_channels, 1, 1), jnp.float32) * 0.1
        self.gamma_s4 = 1.0 + 0.1 * jax.random.normal(ks[1], (out_channels,), jnp.float32)
        self.beta_s4 = 0.1 * jax.random.normal(ks[2], (out_channels,), jnp.float32)
        self.mean_s4 = 0.1 * jax.random.normal(ks[3], (out_channels,), jnp.float32)
        self.var_s4 = 0.5 + jax.random.uniform(ks[4], (out_channels,), jnp.float32)
        # downsample_s3 branch (input has in_channels // 2)
        self.w_s3 = jax.random.normal(
            ks[5], (out_channels, in_channels // 2, 1, 1), jnp.float32) * 0.1
        self.gamma_s3 = 1.0 + 0.1 * jax.random.normal(ks[6], (out_channels,), jnp.float32)
        self.beta_s3 = 0.1 * jax.random.normal(ks[7], (out_channels,), jnp.float32)
        self.mean_s3 = 0.1 * jax.random.normal(ks[8], (out_channels,), jnp.float32)
        self.var_s3 = 0.5 + jax.random.uniform(ks[9], (out_channels,), jnp.float32)

    def params_s4(self):
        return (self.w_s4, self.gamma_s4, self.beta_s4, self.mean_s4, self.var_s4)

    def params_s3(self):
        return (self.w_s3, self.gamma_s3, self.beta_s3, self.mean_s3, self.var_s3)

    def __call__(self, xs4, xs3, tile_hw=None, out_dtype=None):
        return shrink_channel_s3s4(xs4, xs3, self.params_s4(), self.params_s3(),
                                   tile_hw=tile_hw, out_dtype=out_dtype)


# ---------------------------------------------------------------------------
# Pure-JAX reference + test
# ---------------------------------------------------------------------------

def _reference(xs4, xs3, mod, eps=1e-5):
    def branch(x, w, gamma, beta, mean, var):
        B, Cin, H, W = x.shape
        Cout = w.shape[0]
        xm = jnp.transpose(x, (0, 2, 3, 1)).reshape(-1, Cin)
        y = xm @ w.reshape(Cout, Cin).T
        scale = gamma / jnp.sqrt(var + eps)
        y = y * scale + (beta - mean * scale)
        y = jnp.maximum(y, 0.0)
        return jnp.transpose(y.reshape(B, H, W, Cout), (0, 3, 1, 2))
    return (branch(xs4, mod.w_s4, mod.gamma_s4, mod.beta_s4, mod.mean_s4, mod.var_s4),
            branch(xs3, mod.w_s3, mod.gamma_s3, mod.beta_s3, mod.mean_s3, mod.var_s3))


if __name__ == "__main__":
    key = jax.random.PRNGKey(0)
    k_p, k_x4, k_x3, k_x4b, k_x3b = jax.random.split(key, 5)

    in_channels, out_channels = 4, 8
    B, H, W = 2, 16, 16

    mod = ShrinkChannelS3S4Pallas(in_channels, out_channels, k_p)

    # 1) Matching batch/spatial footprint -> fused single pallas_call.
    xs4 = jax.random.normal(k_x4, (B, in_channels, H, W), jnp.float32)
    xs3 = jax.random.normal(k_x3, (B, in_channels // 2, H, W), jnp.float32)
    ys4, ys3 = mod(xs4, xs3)
    jax.block_until_ready((ys4, ys3))
    r4, r3 = _reference(xs4, xs3, mod)
    assert ys4.shape == (B, out_channels, H, W)
    assert ys3.shape == (B, out_channels, H, W)
    assert jnp.allclose(ys4, r4, atol=1e-5), "fused xs4 branch mismatch"
    assert jnp.allclose(ys3, r3, atol=1e-5), "fused xs3 branch mismatch"

    # 2) Different spatial footprints (typical s3/s4 strides) -> two calls.
    xs4b = jax.random.normal(k_x4b, (B, in_channels, H // 2, W // 2), jnp.float32)
    xs3b = jax.random.normal(k_x3b, (B, in_channels // 2, H, W), jnp.float32)
    ys4b, ys3b = mod(xs4b, xs3b)
    jax.block_until_ready((ys4b, ys3b))
    r4b, r3b = _reference(xs4b, xs3b, mod)
    assert jnp.allclose(ys4b, r4b, atol=1e-5), "split xs4 branch mismatch"
    assert jnp.allclose(ys3b, r3b, atol=1e-5), "split xs3 branch mismatch"

    print("KERNEL_OK")
</pallas_src>

<mosaic_0001>
module attributes {stable_mosaic.version = 11 : i64} {
  func.func @_fused_branches_kernel(%arg0: i32, %arg1: i32, %arg2: memref<1x4x256xf32, #tpu.memory_space<vmem>>, %arg3: memref<8x4xf32, #tpu.memory_space<vmem>>, %arg4: memref<8x1xf32, #tpu.memory_space<vmem>>, %arg5: memref<1x2x256xf32, #tpu.memory_space<vmem>>, %arg6: memref<8x2xf32, #tpu.memory_space<vmem>>, %arg7: memref<8x1xf32, #tpu.memory_space<vmem>>, %arg8: memref<1x8x256xf32, #tpu.memory_space<vmem>>, %arg9: memref<1x8x256xf32, #tpu.memory_space<vmem>>) attributes {dimension_semantics = [#tpu.dimension_semantics<parallel>, #tpu.dimension_semantics<parallel>], iteration_bounds = array<i64: 2, 1>, scalar_prefetch = 0 : i64, scratch_operands = 0 : i64, tpu.core_type = #tpu.core_type<tc>, window_params = [{transform_indices = @transform_0, window_bounds = array<i64: 1, 4, 256>}, {pipeline_mode = #tpu.pipeline_mode<synchronous>, transform_indices = @transform_1, window_bounds = array<i64: 8, 4>}, {pipeline_mode = #tpu.pipeline_mode<synchronous>, transform_indices = @transform_2, window_bounds = array<i64: 8, 1>}, {transform_indices = @transform_3, window_bounds = array<i64: 1, 2, 256>}, {pipeline_mode = #tpu.pipeline_mode<synchronous>, transform_indices = @transform_4, window_bounds = array<i64: 8, 2>}, {pipeline_mode = #tpu.pipeline_mode<synchronous>, transform_indices = @transform_5, window_bounds = array<i64: 8, 1>}, {transform_indices = @transform_6, window_bounds = array<i64: 1, 8, 256>}, {transform_indices = @transform_7, window_bounds = array<i64: 1, 8, 256>}]} {
    %c0 = arith.constant 0 : index
    %c0_0 = arith.constant 0 : index
    %0 = vector.load %arg3[%c0, %c0_0] : memref<8x4xf32, #tpu.memory_space<vmem>>, vector<8x4xf32>
    %c0_1 = arith.constant 0 : index
    %c0_2 = arith.constant 0 : index
    %c0_3 = arith.constant 0 : index
    %1 = vector.load %arg2[%c0_1, %c0_2, %c0_3] : memref<1x4x256xf32, #tpu.memory_space<vmem>>, vector<1x4x256xf32>
    %2 = vector.shape_cast %1 : vector<1x4x256xf32> to vector<4x256xf32>
    %cst = arith.constant dense<0.000000e+00> : vector<8x256xf32>
    %3 = tpu.matmul %0, %2, %cst {dimension_numbers = #tpu.dot_dimension_numbers<[1], [0], [0], [1], [0, 0, 1, 1], [], []>} : vector<8x4xf32>, vector<4x256xf32>, vector<8x256xf32> -> vector<8x256xf32>
    %c0_4 = arith.constant 0 : index
    %c0_5 = arith.constant 0 : index
    %4 = vector.load %arg4[%c0_4, %c0_5] : memref<8x1xf32, #tpu.memory_space<vmem>>, vector<8x1xf32>
    %5 = vector.broadcast %4 : vector<8x1xf32> to vector<8x256xf32>
    %6 = arith.addf %3, %5 : vector<8x256xf32>
    %cst_6 = arith.constant 0.000000e+00 : f32
    %7 = vector.broadcast %cst_6 : f32 to vector<8x256xf32>
    %8 = arith.maximumf %6, %7 : vector<8x256xf32>
    %c0_7 = arith.constant 0 : index
    %c0_8 = arith.constant 0 : index
    %c0_9 = arith.constant 0 : index
    %9 = vector.load %arg8[%c0_7, %c0_8, %c0_9] : memref<1x8x256xf32, #tpu.memory_space<vmem>>, vector<1x8x256xf32>
    %10 = vector.shape_cast %9 : vector<1x8x256xf32> to vector<8x256xf32>
    %11 = vector.shape_cast %8 : vector<8x256xf32> to vector<1x8x256xf32>
    tpu.vector_store %arg8[%c0_7, %c0_8, %c0_9], %11 {strides = array<i32>} : memref<1x8x256xf32, #tpu.memory_space<vmem>>, vector<1x8x256xf32>,
    %c0_10 = arith.constant 0 : index
    %c0_11 = arith.constant 0 : index
    %12 = vector.load %arg6[%c0_10, %c0_11] : memref<8x2xf32, #tpu.memory_space<vmem>>, vector<8x2xf32>
    %c0_12 = arith.constant 0 : index
    %c0_13 = arith.constant 0 : index
    %c0_14 = arith.constant 0 : index
    %13 = vector.load %arg5[%c0_12, %c0_13, %c0_14] : memref<1x2x256xf32, #tpu.memory_space<vmem>>, vector<1x2x256xf32>
    %14 = vector.shape_cast %13 : vector<1x2x256xf32> to vector<2x256xf32>
    %cst_15 = arith.constant dense<0.000000e+00> : vector<8x256xf32>
    %15 = tpu.matmul %12, %14, %cst_15 {dimension_numbers = #tpu.dot_dimension_numbers<[1], [0], [0], [1], [0, 0, 1, 1], [], []>} : vector<8x2xf32>, vector<2x256xf32>, vector<8x256xf32> -> vector<8x256xf32>
    %c0_16 = arith.constant 0 : index
    %c0_17 = arith.constant 0 : index
    %16 = vector.load %arg7[%c0_16, %c0_17] : memref<8x1xf32, #tpu.memory_space<vmem>>, vector<8x1xf32>
    %17 = vector.broadcast %16 : vector<8x1xf32> to vector<8x256xf32>
    %18 = arith.addf %15, %17 : vector<8x256xf32>
    %cst_18 = arith.constant 0.000000e+00 : f32
    %19 = vector.broadcast %cst_18 : f32 to vector<8x256xf32>
    %20 = arith.maximumf %18, %19 : vector<8x256xf32>
    %c0_19 = arith.constant 0 : index
    %c0_20 = arith.constant 0 : index
    %c0_21 = arith.constant 0 : index
    %21 = vector.load %arg9[%c0_19, %c0_20, %c0_21] : memref<1x8x256xf32, #tpu.memory_space<vmem>>, vector<1x8x256xf32>
    %22 = vector.shape_cast %21 : vector<1x8x256xf32> to vector<8x256xf32>
    %23 = vector.shape_cast %20 : vector<8x256xf32> to vector<1x8x256xf32>
    tpu.vector_store %arg9[%c0_19, %c0_20, %c0_21], %23 {strides = array<i32>} : memref<1x8x256xf32, #tpu.memory_space<vmem>>, vector<1x8x256xf32>,
    return
  }
  func.func @transform_0(%arg0: i32, %arg1: i32) -> (i32, i32, i32) {
    %c0_i32 = arith.constant 0 : i32
    %c0_i32_0 = arith.constant 0 : i32
    return %arg0, %c0_i32, %arg1 : i32, i32, i32
  }
  func.func @transform_1(%arg0: i32, %arg1: i32) -> (i32, i32) {
    %c0_i32 = arith.constant 0 : i32
    %c0_i32_0 = arith.constant 0 : i32
    %c0_i32_1 = arith.constant 0 : i32
    return %c0_i32, %c0_i32_0 : i32, i32
  }
  func.func @transform_2(%arg0: i32, %arg1: i32) -> (i32, i32) {
    %c0_i32 = arith.constant 0 : i32
    %c0_i32_0 = arith.constant 0 : i32
    %c0_i32_1 = arith.constant 0 : i32
    return %c0_i32, %c0_i32_0 : i32, i32
  }
  func.func @transform_3(%arg0: i32, %arg1: i32) -> (i32, i32, i32) {
    %c0_i32 = arith.constant 0 : i32
    %c0_i32_0 = arith.constant 0 : i32
    return %arg0, %c0_i32, %arg1 : i32, i32, i32
  }
  func.func @transform_4(%arg0: i32, %arg1: i32) -> (i32, i32) {
    %c0_i32 = arith.constant 0 : i32
    %c0_i32_0 = arith.constant 0 : i32
    %c0_i32_1 = arith.constant 0 : i32
    return %c0_i32, %c0_i32_0 : i32, i32
  }
  func.func @transform_5(%arg0: i32, %arg1: i32) -> (i32, i32) {
    %c0_i32 = arith.constant 0 : i32
    %c0_i32_0 = arith.constant 0 : i32
    %c0_i32_1 = arith.constant 0 : i32
    return %c0_i32, %c0_i32_0 : i32, i32
  }
  func.func @transform_6(%arg0: i32, %arg1: i32) -> (i32, i32, i32) {
    %c0_i32 = arith.constant 0 : i32
    %c0_i32_0 = arith.constant 0 : i32
    return %arg0, %c0_i32, %arg1 : i32, i32, i32
  }
  func.func @transform_7(%arg0: i32, %arg1: i32) -> (i32, i32, i32) {
    %c0_i32 = arith.constant 0 : i32
    %c0_i32_0 = arith.constant 0 : i32
    return %arg0, %c0_i32, %arg1 : i32, i32, i32
  }
}

</mosaic_0001>

<bundles_post_ra>
// kernel: tpu_custom_call.1
= control target key start
LH: loop header
LB: loop body
LE: loop exit
PB: predicated region body
PF: predicated region fallthrough
CT: control target
= control target key end

     0   :  { %s1130_s0 = inlined_call_operand.vmem [shape: f32[2,4,256], index: 0, kind: input, shape index: {}]   ;;  %s1131_s1 = inlined_call_operand.vmem [shape: f32[8,4], index: 1, kind: input, shape index: {}]   ;;  %s1132_s2 = inlined_call_operand.vmem [shape: f32[8,1], index: 2, kind: input, shape index: {}]   ;;  %s1133_s3 = inlined_call_operand.vmem [shape: f32[2,2,256], index: 3, kind: input, shape index: {}]   ;;  %s1134_s4 = inlined_call_operand.vmem [shape: f32[8,2], index: 4, kind: input, shape index: {}]   ;;  %s1135_s5 = inlined_call_operand.vmem [shape: f32[8,1], index: 5, kind: input, shape index: {}]   ;;  %s1136_s6 = inlined_call_operand.hbm [shape: f32[2,8,256], index: 6, kind: output, shape index: {0}]   ;;  %s1137_s7 = inlined_call_operand.hbm [shape: f32[2,8,256], index: 7, kind: output, shape index: {1}]  }
   0x1   :  { %1138 = sst [smem:[#allocation8_spill]] %s1130_s0 }
   0x2   :  { %13 = vsyncpa [#allocation3], 0 }
   0x3   :  { %15 = vsyncpa [#allocation3 + $0x1], 0 }
   0x4   :  { %16 = vsyncpa [#allocation5], 0 }
   0x5   :  { %18 = vsyncpa [#allocation5 + $0x1], 0  ;;  %s970_s24 = smov 0   ;;  %s972_s25 = smov 0  }
   0x6   :  { %s974_s26 = smov 0   ;;  %s976_s27 = smov 0  }
   0x7   :  { %s978_s28 = smov 0   ;;  %s980_s29 = smov 0  }
   0x8 LB: > { %s720_s30 = sadd.s32 4294967295, %s924_s29   ;;  %s721_s8 = sadd.s32 4294967294, %s924_s29   ;;  %s924_s29 = sphi %s980_s29, %s24_s29   ;;  %s920_s28 = sphi %s978_s28, %s1146_s28   ;;  %s916_s27 = sphi %s976_s27, %s1145_s27   ;;  %s912_s26 = sphi %s974_s26, %s1144_s26   ;;  %s908_s25 = sphi %s972_s25, %s1143_s25   ;;  %s904_s24 = sphi %s970_s24, %s1142_s24  }
   0x9   : > { %s36_s9 = sadd.s32 1, %s920_s28  ;;  %s185_s10 = sadd.s32 1, %s912_s26 }
   0xa   : > { %p38_p0 = scmp.ge.s32.totalorder %s36_s9, 2  ;;  %p195_p1 = scmp.ne.s32.totalorder %s912_s26, %s908_s25 }
   0xb   : > { %p196_p2 = scmp.eq.s32.totalorder %s720_s30, 1  ;;  %p201_p3 = scmp.ne.s32.totalorder %s908_s25, %s904_s24 }
   0xc   : > { %s1148_s9 = smov (%p38_p0, %s36_s9), 0  ;;  %p202_p5 = scmp.eq.s32.totalorder %s721_s8, 1 }
   0xd   : > { %p1010_p4 = por %p196_p2, %p195_p1  ;;  %s180_s12 = ssub.s32 %s920_s28, %s1148_s9 }
   0xe   : > { %p724_p6 = scmp.ge.s32.totalorder %s924_s29, 1  ;;  %p183_p7 = scmp.eq.s32.totalorder %s180_s12, 0 }
   0xf   : > { %p1017_p8 = por %p202_p5, %p201_p3  ;;  %p286_p9 = scmp.lt.s32.totalorder %s924_s29, 3 }
  0x10   : > { %s1023_s14 = scalar_select %p183_p7, %s912_s26, %s185_s10  }
  0x11   : > { %p287_p10 = pnand %p724_p6, %p286_p9 }
  0x12   : > { %p337_p11 = scmp.lt.s32.totalorder (!%p287_p10), %s916_s27, 1  ;;  %v926_v0 = vmov (!%p287_p10), 0.0   ;;  %v360_v1 = vld [vmem:[%s1132_s2] sm:$0xff] (!%p287_p10)  ;;  %v927_v2 = vmov (!%p287_p10), 0   ;;  %s1141_s0 = sld [smem:[#allocation8_spill]] (!%p287_p10)  ;;  %vm372_vm0 = vcmask (!%p287_p10), 1043456  }
  0x13   : > { %290 = sbr.rel (%p287_p10) target bundleno = 290 (0x122), region = 44  ;;  %441 = vmatprep.mubr.f32.mxu0 (!%p287_p10), %v926_v0  ;;  %542 = vmatprep.mubr.f32.mxu1 (!%p287_p10), %v926_v0  ;;  %v454_v3 = vld [vmem:[%s1135_s5] sm:$0xff] (!%p287_p10)  ;;  %vm473_vm1 = vcmask (!%p287_p10), 1041408   ;;  %vm368_vm2 = vcmask (!%p287_p10), 31744   ;;  %vm469_vm3 = vcmask (!%p287_p10), 15360   ;;  %s748_s21 = sshll.u32 (!%p287_p10), %s916_s27, 8 }
  0x14   : > { %812 = vset.pattern.permute.xlu0 (!%p287_p10), %v927_v2  ;;  %v358_v8 = vld [vmem:[%s1131_s1] sm:$0xff] (!%p287_p10)  ;;  %s1053_s15 = scalar_lea.hbm (!%p287_p10), %s1136_s6, %s748_s21  ;;  %s928_s10 = smov (!%p287_p10), [#allocation2]  }
  0x15   : > { %363 = vperm.xlu0 (!%p287_p10), %812, %v360_v1   ;;  %v452_v9 = vld [vmem:[%s1134_s4] sm:$0xff] (!%p287_p10) }
  0x19   : > { %457 = vperm.xlu0 (!%p287_p10), %812, %v454_v3  }
  0x1a   : > { %s338_s17 = scalar_select %p337_p11, %s916_s27, 1 }
  0x1c   : > { %s746_s18 = sshll.u32 %s338_s17, 3  ;;  %s747_s19 = sshll.u32 %s338_s17, 2 }
  0x1d   : > { %s344_s30 = scalar_lea.vmem %s1141_s0, %s746_s18  ;;  %s354_s12 = scalar_lea.vmem %s1133_s3, %s747_s19 }
  0x1e   : > { %v359_v4 = vld [vmem:[%s344_s30] sm:$0xff]  ;;  %s1046_s19 = sand.u32 1, %s908_s25   ;;  %s1060_s17 = scalar_lea.hbm %s1137_s7, %s748_s21 }
  0x1f   : > { %v734_v5 = vld.sshfl [vmem:[%s354_s12] sm:$0x33 pattern:$0x76325410]  ;;  %v367_v6 = vcombine.high %v359_v4, %v359_v4  ;;  %s725_s20 = sshll.u32 %s1046_s19, 4  ;;  %s554_s18 = scalar_lea.sflag [#allocation3], %s1046_s19 }
  0x20   : > { %v468_v7 = vcombine.high %v734_v5, %v734_v5  ;;  %s328_s22 = scalar_lea.vmem [#allocation2], %s725_s20  ;;  %s335_s30 = scalar_lea.vmem [#allocation4], %s725_s20 }
  0x21   : > { %731 = vmatprep.subr.msk.mxu0 %vm372_vm0, %v367_v6  ;;  %s575_s23 = sshll.u32 %s328_s22, 4  ;;  %s591_s8 = sshll.u32 %s335_s30, 4  ;;  %s1055_s23 = int_to_ptr.vmem [resolvable:$true] %s575_s23  ;;  %s1062_s8 = int_to_ptr.vmem [resolvable:$true] %s591_s8 }
  0x22   : > { %735 = vmatprep.subr.msk.mxu1 %vm473_vm1, %v468_v7  ;;  %732 = vmatpush1.msk.msra.mxu0 %vm372_vm0, %v359_v4  ;;  %s814_s20 = scalar_lea.vmem %s1055_s23, 256  ;;  %s818_s12 = sshll.u32 %s928_s10, 4  ;;  %s819_s12 = int_to_ptr.vmem [resolvable:$false] %s818_s12 }
  0x23   : > { %736 = vmatpush1.msk.msra.mxu1 %vm473_vm1, %v734_v5  ;;  %733 = vmatmul.mubr.msk.f32.vlgmr.msra.gmra.mrb[0].mxu0 %vm368_vm2, %v358_v8  ;;  %p815_p12 = scmp.ne.s32.totalorder %s1055_s23, %s814_s20  ;;  %s820_s0 = scalar_lea.vmem %s819_s12, 512 }
  0x24   : > { %737 = vmatmul.mubr.msk.f32.vlgmr.msra.gmra.mrb[0].mxu1 %vm469_vm3, %v452_v9  ;;  %p821_p1 = scmp.lt.s32.totalorder %s1055_s23, %s819_s12  ;;  %p822_p2 = scmp.lt.s32.totalorder %s820_s0, %s814_s20 }
  0x25   : > { %p816_p13 = pnand %p815_p12, %p1010_p4 }
  0x26   : > { %p823_p3 = por %p822_p2, %p821_p1 }
  0x27   : > { %p817_p0 = pneg %p816_p13 }
  0x29   : > { %p824_p5 = pnand %p823_p3, %p817_p0 }
  0x94   : > { %v364_v10 = vpop.permute.xlu0 %363 }
  0x98   : > { %v458_v11 = vpop.permute.xlu0 %457 }
  0xf6   : > { %v443_v12 = vpop.f32.mrb[0].mxu0 }
  0xf7   : > { %v544_v13 = vpop.f32.mrb[0].mxu1  ;;  %v444_v14 = vadd.f32 %v443_v12, %v364_v10  ;;  %v445_v16 = vpop.f32.mrb[1].mxu0 }
  0xf8   : > { %v545_v15 = vadd.f32 %v544_v13, %v458_v11  ;;  %v546_v17 = vpop.f32.mrb[1].mxu1  ;;  %v446_v18 = vadd.f32 %v445_v16, %v364_v10 }
  0xf9   : > { %v547_v19 = vadd.f32 %v546_v17, %v458_v11  ;;  %v448_v20 = vmax.f32 %v444_v14, 0.0 }
  0xfa   : > { %v549_v21 = vmax.f32 %v545_v15, 0.0  ;;  %v449_v22 = vmax.f32 %v446_v18, 0.0 }
  0xfb   : > { %v550_v23 = vmax.f32 %v547_v19, 0.0  ;;  %450 = vst [vmem:[%s328_s22] sm:$0xff] %v448_v20 }
  0xfc   : > { %551 = vst [vmem:[%s335_s30] sm:$0xff] %v549_v21  ;;  %451 = vst [vmem:[%s328_s22 + $0x8] sm:$0xff] %v449_v22 }
  0xfd   : > { %552 = vst [vmem:[%s335_s30 + $0x8] sm:$0xff] %v550_v23 }
  0xfe   : > { %827 = shalt.err (!%p824_p5)
}
  0xff   : > { %s828_s21 = scalar_lea.hbm %s1053_s15, 256  ;;  %s832_s27 = scalar_lea.hbm %s1136_s6, 512 }
 0x100   : > { %p829_p6 = scmp.ne.s32.totalorder %s1053_s15, %s828_s21  ;;  %p833_p10 = scmp.lt.u32.totalorder %s1053_s15, %s1136_s6 }
 0x101   : > { %p834_p11 = scmp.lt.u32.totalorder %s832_s27, %s828_s21  ;;  %p836_p13 = scmp.lt.u32.totalorder %s828_s21, %s1053_s15 }
 0x102   : > { %p830_p7 = pnand %p829_p6, %p1010_p4 }
 0x103   : > { %p835_p12 = por %p834_p11, %p833_p10 }
 0x104   : > { %p831_p9 = pneg %p830_p7 }
 0x105   : > { %p837_p0 = por %p836_p13, %p835_p12 }
 0x107   : > { %p838_p1 = pnand %p837_p0, %p831_p9 }
 0x109   : > { %841 = shalt.err (!%p838_p1)
}
 0x10a   : > { %750 = dma.vmem_to_hbm [thread:$0]  (%p1010_p4), %s1055_s23, 256, %s1053_s15, %s554_s18  }
 0x10b   : > { %s559_s0 = scalar_lea.sflag [#allocation5], %s1046_s19  ;;  %s842_s20 = scalar_lea.vmem %s1062_s8, 256 }
 0x10c   : > { %p843_p2 = scmp.ne.s32.totalorder %s1062_s8, %s842_s20  ;;  %s929_s12 = smov [#allocation4]  }
 0x10d   : > { %s846_s21 = sshll.u32 %s929_s12, 4  ;;  %s847_s21 = int_to_ptr.vmem [resolvable:$false] %s846_s21 }
 0x10e   : > { %p844_p3 = pnand %p843_p2, %p1010_p4  ;;  %s848_s22 = scalar_lea.vmem %s847_s21, 512 }
 0x10f   : > { %p849_p6 = scmp.lt.s32.totalorder %s1062_s8, %s847_s21  ;;  %p850_p7 = scmp.lt.s32.totalorder %s848_s22, %s842_s20 }
 0x110   : > { %p845_p5 = pneg %p844_p3 }
 0x111   : > { %p851_p9 = por %p850_p7, %p849_p6 }
 0x113   : > { %p852_p10 = pnand %p851_p9, %p845_p5 }
 0x115   : > { %855 = shalt.err (!%p852_p10)
}
 0x116   : > { %s856_s19 = scalar_lea.hbm %s1060_s17, 256  ;;  %s860_s18 = scalar_lea.hbm %s1137_s7, 512 }
 0x117   : > { %p857_p11 = scmp.ne.s32.totalorder %s1060_s17, %s856_s19  ;;  %p861_p0 = scmp.lt.u32.totalorder %s1060_s17, %s1137_s7 }
 0x118   : > { %p862_p1 = scmp.lt.u32.totalorder %s860_s18, %s856_s19  ;;  %p864_p3 = scmp.lt.u32.totalorder %s856_s19, %s1060_s17 }
 0x119   : > { %p858_p12 = pnand %p857_p11, %p1010_p4 }
 0x11a   : > { %p863_p2 = por %p862_p1, %p861_p0 }
 0x11b   : > { %p859_p13 = pneg %p858_p12 }
 0x11c   : > { %p865_p5 = por %p864_p3, %p863_p2 }
 0x11e   : > { %p866_p6 = pnand %p865_p5, %p859_p13 }
 0x120   : > { %869 = shalt.err (!%p866_p6)
}
 0x121   : > { %751 = dma.vmem_to_hbm [thread:$0]  (%p1010_p4), %s1062_s8, 256, %s1060_s17, %s559_s0  }
 0x122 PF: > { %p761_p7 = scmp.ge.s32.totalorder %s924_s29, 2  ;;  %s603_s16 = sand.u32 1, %s904_s24  }
 0x123   : > { %s604_s10 = scalar_lea.sflag [#allocation3], %s603_s16 }
 0x124   : > { %p755_p9 = pnand %p761_p7, %p1017_p8 }
 0x126   : > { %895 = dma.done.wait (!%p755_p9), %s604_s10, 256  }
 0x127   : > { %897 = vsyncadd (!%p755_p9), %s604_s10, 4294967040  ;;  %s613_s20 = scalar_lea.sflag [#allocation5], %s603_s16 }
 0x128   : > { %899 = dma.done.wait (!%p755_p9), %s613_s20, 256  }
 0x129   : > { %901 = vsyncadd (!%p755_p9), %s613_s20, 4294967040  ;;  %s24_s29 = sadd.s32 1, %s924_s29   ;;  %s1142_s24 = smov %s908_s25 }
 0x12a   : > { %p21_p10 = scmp.ge.s32.totalorder %s24_s29, 4   ;;  %s1143_s25 = smov %s912_s26 }
 0x12b   : > { %s1144_s26 = smov %s1023_s14  ;;  %s1145_s27 = smov %s920_s28 }
 0x12c   : > { %s1146_s28 = smov %s1148_s9  ;;  %23 = sbr.rel (!%p21_p10) target bundleno = 8 (0x8), region = 99 }
 0x133   :  { %618 = vsyncpa [#allocation3], 1 }
 0x134   :  { %620 = vsyncpa [#allocation3 + $0x1], 1 }
 0x135   :  { %621 = vsyncpa [#allocation5], 1 }
 0x136   :  { %623 = vsyncpa [#allocation5 + $0x1], 1 }

</bundles_post_ra>
